<compile_context>
chip_gen: v6e
topology: v6e:2x2x1
jax: 0.10.0
libtpu: 0.0.40
codegen_flags: <defaults>
</compile_context>

<pallas_src>
import jax
import jax.numpy as jnp
from jax.experimental import pallas as pl
from jax.experimental.pallas import tpu as pltpu


def _round_up(x, m):
    return (x + m - 1) // m * m


def critic_kernel(x_ref, w1_ref, b1_ref, w2_ref, b2_ref, w3r_ref, b3_ref, o_ref):
    # fc1 + ReLU : bf16 operands, f32 accumulation on the MXU.
    h1 = jnp.dot(x_ref[...], w1_ref[...], preferred_element_type=jnp.float32)
    h1 = jnp.maximum(h1 + b1_ref[...], 0.0).astype(jnp.bfloat16)
    # fc2 + ReLU
    h2 = jnp.dot(h1, w2_ref[...], preferred_element_type=jnp.float32)
    h2 = jnp.maximum(h2 + b2_ref[...], 0.0)
    # fc3 value head (N=1): VPU multiply + lane reduce instead of an MXU
    # matmul that would occupy 1/128 (v5e) or 1/256 (v6e/v7x) of the MXU tile.
    v = jnp.sum(h2 * w3r_ref[...].astype(jnp.float32), axis=-1, keepdims=True)
    # NOTE: (TB, 1) output lowers to masked stores (lane width 1 < 128); the
    # output is tiny, so this is acceptable here.
    o_ref[...] = v + b3_ref[...]


def critic_forward(x, params, *, block_b=1024):
    """x: (B, input_dim) float32 -> value: (B, 1) float32."""
    w1, b1, w2, b2, w3, b3 = params
    B, in_dim = x.shape
    hidden = w1.shape[1]

    # Batch tile: large enough to amortize ~0.35us/grid-step overhead, small
    # enough that 2 double-buffered x tiles + weights stay far below the
    # 32 MiB default scoped VMEM (and v7x's 64 MiB physical VMEM).
    TB = min(block_b, _round_up(B, 8))
    B_pad = _round_up(B, TB)
    if B_pad != B:
        x = jnp.pad(x, ((0, B_pad - B), (0, 0)))

    # bf16 activations/weights (HBM-bound workload); biases stay f32.
    x_bf16 = x.astype(jnp.bfloat16)
    w3_row = w3.reshape(1, hidden)  # (hidden, 1) -> (1, hidden) row for VPU reduce

    grid = (B_pad // TB,)

    flops = 2 * B_pad * (in_dim * hidden + hidden * hidden + hidden)
    bytes_accessed = (
        B_pad * in_dim * 2                                    # x (bf16)
        + (in_dim * hidden + hidden * hidden + hidden) * 2    # weights (bf16)
        + (2 * hidden + 1) * 4                                # biases (f32)
        + B_pad * 4                                           # output (f32)
    )

    out = pl.pallas_call(
        critic_kernel,
        out_shape=jax.ShapeDtypeStruct((B_pad, 1), jnp.float32),
        grid=grid,
        in_specs=[
            pl.BlockSpec((TB, in_dim), lambda i: (i, 0)),   # x: tiled over batch
            pl.BlockSpec(w1.shape, lambda i: (0, 0)),       # weights resident in VMEM
            pl.BlockSpec(b1.shape, lambda i: (0, 0)),
            pl.BlockSpec(w2.shape, lambda i: (0, 0)),
            pl.BlockSpec(b2.shape, lambda i: (0, 0)),
            pl.BlockSpec(w3_row.shape, lambda i: (0, 0)),
            pl.BlockSpec(b3.shape, lambda i: (0, 0)),
        ],
        out_specs=pl.BlockSpec((TB, 1), lambda i: (i, 0)),
        compiler_params=pltpu.CompilerParams(
            dimension_semantics=("parallel",)),             # megacore on v7x
        cost_estimate=pl.CostEstimate(
            flops=flops, transcendentals=0, bytes_accessed=bytes_accessed),
    )(x_bf16, w1, b1, w2, b2, w3_row, b3)

    return out[:B]


def orthogonal_init(key, in_dim, out_dim, gain=jnp.sqrt(2.0)):
    """PyTorch nn.init.orthogonal_ analogue; returns W of shape (in, out)."""
    return jax.nn.initializers.orthogonal(scale=gain)(
        key, (in_dim, out_dim), jnp.float32)


def make_critic_params(input_dim, hidden_dim, key):
    k1, k2, k3 = jax.random.split(key, 3)
    # Weight matrices in bf16 (HBM-bound workload + native bf16 MXU on
    # v6e/v7x); biases in f32.  TODO(synk): pad hidden_dim to 128 (or pack
    # multiple agents' critics into the lane axis) to use >25% of each vreg.
    w1 = orthogonal_init(k1, input_dim, hidden_dim).astype(jnp.bfloat16)
    b1 = jnp.zeros((1, hidden_dim), jnp.float32)
    w2 = orthogonal_init(k2, hidden_dim, hidden_dim).astype(jnp.bfloat16)
    b2 = jnp.zeros((1, hidden_dim), jnp.float32)
    w3 = orthogonal_init(k3, hidden_dim, 1).astype(jnp.bfloat16)
    b3 = jnp.zeros((1, 1), jnp.float32)
    return (w1, b1, w2, b2, w3, b3)


def critic_reference(x, params):
    """Pure-JAX reference mirroring the kernel's bf16 rounding points."""
    w1, b1, w2, b2, w3, b3 = params
    xf = x.astype(jnp.bfloat16).astype(jnp.float32)
    w1f, w2f, w3f = (w.astype(jnp.float32) for w in (w1, w2, w3))
    h1 = jnp.maximum(xf @ w1f + b1, 0.0).astype(jnp.bfloat16).astype(jnp.float32)
    h2 = jnp.maximum(h1 @ w2f + b2, 0.0)
    return h2 @ w3f + b3


if __name__ == "__main__":
    input_dim = 16
    hidden_dim = 32
    batch = 300          # not a multiple of the tile -> exercises tail padding

    key = jax.random.PRNGKey(0)
    k_x, k_p = jax.random.split(key)
    x = jax.random.normal(k_x, (batch, input_dim), jnp.float32)
    params = make_critic_params(input_dim, hidden_dim, k_p)

    # block_b=128 so the small demo batch still spans multiple grid steps.
    value = critic_forward(x, params, block_b=128)
    value = jax.block_until_ready(value)

    ref = critic_reference(x, params)
    assert value.shape == (batch, 1)
    assert jnp.allclose(value, ref, atol=1e-3, rtol=1e-3), (
        float(jnp.max(jnp.abs(value - ref))))

    print("KERNEL_OK")
</pallas_src>

<mosaic_0001>
module attributes {stable_mosaic.version = 11 : i64} {
  func.func @critic_kernel(%arg0: i32, %arg1: memref<128x16xbf16, #tpu.memory_space<vmem>>, %arg2: memref<16x32xbf16, #tpu.memory_space<vmem>>, %arg3: memref<1x32xf32, #tpu.memory_space<vmem>>, %arg4: memref<32x32xbf16, #tpu.memory_space<vmem>>, %arg5: memref<1x32xf32, #tpu.memory_space<vmem>>, %arg6: memref<1x32xbf16, #tpu.memory_space<vmem>>, %arg7: memref<1x1xf32, #tpu.memory_space<vmem>>, %arg8: memref<128x1xf32, #tpu.memory_space<vmem>>) attributes {dimension_semantics = [#tpu.dimension_semantics<parallel>], iteration_bounds = array<i64: 3>, scalar_prefetch = 0 : i64, scratch_operands = 0 : i64, tpu.core_type = #tpu.core_type<tc>, window_params = [{transform_indices = @transform_0, window_bounds = array<i64: 128, 16>}, {pipeline_mode = #tpu.pipeline_mode<synchronous>, transform_indices = @transform_1, window_bounds = array<i64: 16, 32>}, {pipeline_mode = #tpu.pipeline_mode<synchronous>, transform_indices = @transform_2, window_bounds = array<i64: 1, 32>}, {pipeline_mode = #tpu.pipeline_mode<synchronous>, transform_indices = @transform_3, window_bounds = array<i64: 32, 32>}, {pipeline_mode = #tpu.pipeline_mode<synchronous>, transform_indices = @transform_4, window_bounds = array<i64: 1, 32>}, {pipeline_mode = #tpu.pipeline_mode<synchronous>, transform_indices = @transform_5, window_bounds = array<i64: 1, 32>}, {pipeline_mode = #tpu.pipeline_mode<synchronous>, transform_indices = @transform_6, window_bounds = array<i64: 1, 1>}, {transform_indices = @transform_7, window_bounds = array<i64: 128, 1>}]} {
    %c0 = arith.constant 0 : index
    %c0_0 = arith.constant 0 : index
    %0 = vector.load %arg1[%c0, %c0_0] : memref<128x16xbf16, #tpu.memory_space<vmem>>, vector<128x16xbf16>
    %c0_1 = arith.constant 0 : index
    %c0_2 = arith.constant 0 : index
    %1 = vector.load %arg2[%c0_1, %c0_2] : memref<16x32xbf16, #tpu.memory_space<vmem>>, vector<16x32xbf16>
    %cst = arith.constant dense<0.000000e+00> : vector<128x32xf32>
    %2 = tpu.matmul %0, %1, %cst {dimension_numbers = #tpu.dot_dimension_numbers<[1], [0], [0], [1], [0, 0, 1, 1], [], []>} : vector<128x16xbf16>, vector<16x32xbf16>, vector<128x32xf32> -> vector<128x32xf32>
    %c0_3 = arith.constant 0 : index
    %c0_4 = arith.constant 0 : index
    %3 = vector.load %arg3[%c0_3, %c0_4] : memref<1x32xf32, #tpu.memory_space<vmem>>, vector<1x32xf32>
    %4 = vector.broadcast %3 : vector<1x32xf32> to vector<128x32xf32>
    %5 = arith.addf %2, %4 : vector<128x32xf32>
    %cst_5 = arith.constant 0.000000e+00 : f32
    %6 = vector.broadcast %cst_5 : f32 to vector<128x32xf32>
    %7 = arith.maximumf %5, %6 : vector<128x32xf32>
    %8 = arith.truncf %7 : vector<128x32xf32> to vector<128x32xbf16>
    %c0_6 = arith.constant 0 : index
    %c0_7 = arith.constant 0 : index
    %9 = vector.load %arg4[%c0_6, %c0_7] : memref<32x32xbf16, #tpu.memory_space<vmem>>, vector<32x32xbf16>
    %cst_8 = arith.constant dense<0.000000e+00> : vector<128x32xf32>
    %10 = tpu.matmul %8, %9, %cst_8 {dimension_numbers = #tpu.dot_dimension_numbers<[1], [0], [0], [1], [0, 0, 1, 1], [], []>} : vector<128x32xbf16>, vector<32x32xbf16>, vector<128x32xf32> -> vector<128x32xf32>
    %c0_9 = arith.constant 0 : index
    %c0_10 = arith.constant 0 : index
    %11 = vector.load %arg5[%c0_9, %c0_10] : memref<1x32xf32, #tpu.memory_space<vmem>>, vector<1x32xf32>
    %12 = vector.broadcast %11 : vector<1x32xf32> to vector<128x32xf32>
    %13 = arith.addf %10, %12 : vector<128x32xf32>
    %cst_11 = arith.constant 0.000000e+00 : f32
    %14 = vector.broadcast %cst_11 : f32 to vector<128x32xf32>
    %15 = arith.maximumf %13, %14 : vector<128x32xf32>
    %c0_12 = arith.constant 0 : index
    %c0_13 = arith.constant 0 : index
    %16 = vector.load %arg6[%c0_12, %c0_13] : memref<1x32xbf16, #tpu.memory_space<vmem>>, vector<1x32xbf16>
    %17 = arith.extf %16 : vector<1x32xbf16> to vector<1x32xf32>
    %18 = vector.broadcast %17 : vector<1x32xf32> to vector<128x32xf32>
    %19 = arith.mulf %15, %18 : vector<128x32xf32>
    %cst_14 = arith.constant dense<0.000000e+00> : vector<128xf32>
    %20 = vector.multi_reduction <add>, %19, %cst_14 [1] : vector<128x32xf32> to vector<128xf32>
    %21 = vector.shape_cast %20 : vector<128xf32> to vector<128x1xf32>
    %c0_15 = arith.constant 0 : index
    %c0_16 = arith.constant 0 : index
    %22 = vector.load %arg7[%c0_15, %c0_16] : memref<1x1xf32, #tpu.memory_space<vmem>>, vector<1x1xf32>
    %23 = vector.broadcast %22 : vector<1x1xf32> to vector<128x1xf32>
    %24 = arith.addf %21, %23 : vector<128x1xf32>
    %c0_17 = arith.constant 0 : index
    %c0_18 = arith.constant 0 : index
    %25 = vector.load %arg8[%c0_17, %c0_18] : memref<128x1xf32, #tpu.memory_space<vmem>>, vector<128x1xf32>
    tpu.vector_store %arg8[%c0_17, %c0_18], %24 {strides = array<i32>} : memref<128x1xf32, #tpu.memory_space<vmem>>, vector<128x1xf32>,
    return
  }
  func.func @transform_0(%arg0: i32) -> (i32, i32) {
    %c0_i32 = arith.constant 0 : i32
    %c0_i32_0 = arith.constant 0 : i32
    return %arg0, %c0_i32 : i32, i32
  }
  func.func @transform_1(%arg0: i32) -> (i32, i32) {
    %c0_i32 = arith.constant 0 : i32
    %c0_i32_0 = arith.constant 0 : i32
    %c0_i32_1 = arith.constant 0 : i32
    return %c0_i32, %c0_i32_0 : i32, i32
  }
  func.func @transform_2(%arg0: i32) -> (i32, i32) {
    %c0_i32 = arith.constant 0 : i32
    %c0_i32_0 = arith.constant 0 : i32
    %c0_i32_1 = arith.constant 0 : i32
    return %c0_i32, %c0_i32_0 : i32, i32
  }
  func.func @transform_3(%arg0: i32) -> (i32, i32) {
    %c0_i32 = arith.constant 0 : i32
    %c0_i32_0 = arith.constant 0 : i32
    %c0_i32_1 = arith.constant 0 : i32
    return %c0_i32, %c0_i32_0 : i32, i32
  }
  func.func @transform_4(%arg0: i32) -> (i32, i32) {
    %c0_i32 = arith.constant 0 : i32
    %c0_i32_0 = arith.constant 0 : i32
    %c0_i32_1 = arith.constant 0 : i32
    return %c0_i32, %c0_i32_0 : i32, i32
  }
  func.func @transform_5(%arg0: i32) -> (i32, i32) {
    %c0_i32 = arith.constant 0 : i32
    %c0_i32_0 = arith.constant 0 : i32
    %c0_i32_1 = arith.constant 0 : i32
    return %c0_i32, %c0_i32_0 : i32, i32
  }
  func.func @transform_6(%arg0: i32) -> (i32, i32) {
    %c0_i32 = arith.constant 0 : i32
    %c0_i32_0 = arith.constant 0 : i32
    %c0_i32_1 = arith.constant 0 : i32
    return %c0_i32, %c0_i32_0 : i32, i32
  }
  func.func @transform_7(%arg0: i32) -> (i32, i32) {
    %c0_i32 = arith.constant 0 : i32
    %c0_i32_0 = arith.constant 0 : i32
    return %arg0, %c0_i32 : i32, i32
  }
}

</mosaic_0001>

<bundles_post_ra>
// kernel: tpu_custom_call.1
= control target key start
LH: loop header
LB: loop body
LE: loop exit
PB: predicated region body
PF: predicated region fallthrough
CT: control target
= control target key end

     0   :  { %s997_s26 = smov 0   ;;  %s1138_s0 = inlined_call_operand.vmem [shape: bf16[384,16], index: 0, kind: input, shape index: {}]   ;;  %s1139_s1 = inlined_call_operand.vmem [shape: bf16[16,32], index: 1, kind: input, shape index: {}]   ;;  %s1140_s2 = inlined_call_operand.vmem [shape: f32[1,32], index: 2, kind: input, shape index: {}]   ;;  %s1141_s3 = inlined_call_operand.vmem [shape: bf16[32,32], index: 3, kind: input, shape index: {}]   ;;  %s1142_s4 = inlined_call_operand.vmem [shape: f32[1,32], index: 4, kind: input, shape index: {}]   ;;  %s1143_s5 = inlined_call_operand.vmem [shape: bf16[1,32], index: 5, kind: input, shape index: {}]   ;;  %s1144_s6 = inlined_call_operand.<no memory space> [shape: f32[1,1], index: 6, kind: input, shape index: {}]   ;;  %s1145_s7 = inlined_call_operand.vmem [shape: f32[384,1], index: 7, kind: output, shape index: {}]  }
   0x1   :  { %v12_v0 = vstv %s1144_s6 }
   0x2   :  { %13 = vst [vmem:[#allocation2] sm:$0x1] %v12_v0 }
   0x3 LB: > { %s829_s27 = sadd.s32 4294967295, %s952_s26   ;;  %p833_p0 = scmp.ge.s32.totalorder %s952_s26, 1  ;;  %s952_s26 = sphi %s997_s26, %s19_s26  }
   0x4   : > { %p240_p1 = scmp.lt.s32.totalorder %s952_s26, 4 }
   0x6   : > { %p241_p2 = pnand %p833_p0, %p240_p1 }
   0x7   : > { %s834_s6 = sshll.u32 (!%p241_p2), %s829_s27, 4 }
   0x8   : > { %244 = sbr.rel (%p241_p2) target bundleno = 599 (0x257), region = 48  ;;  %p273_p3 = scmp.lt.s32.totalorder (!%p241_p2), %s834_s6, 47 }
   0xd   : > { %v935_v1 = vld [vmem:[%s1139_s1] sm:$0xff]   ;;  %s1147_s6 = smov (!%p273_p3, %s834_s6), 47  ;;  %vm356_vm0 = vcmask 130048   ;;  %v944_v10 = vld [vmem:[%s1141_s3 + $0x8] sm:$0xff]   ;;  %vm525_vm1 = vcmask 261120   ;;  %vm756_vm2 = vcmask 7168  }
   0xe   : > { %889 = vmatprep.subr.bf16.mxu0 %v935_v1  ;;  %s835_s30 = sshll.u32 %s1147_s6, 2  ;;  %907 = vmatprep.subr.bf16.mxu1 %v944_v10  ;;  %v945_v11 = vld [vmem:[%s1141_s3] sm:$0xff]   ;;  %s837_s21 = sshll.u32 %s1147_s6, 3 }
   0xf   : > { %890 = vmatpush3.bf16.msra.mxu0 %v935_v1  ;;  %s276_s10 = scalar_lea.vmem %s1138_s0, %s835_s30  ;;  %908 = vmatpush3.bf16.msra.mxu1 %v944_v10  ;;  %v838_v14 = vld [vmem:[%s1140_s2] ss:$0 sm:$0xff]  ;;  %s1101_s24 = scalar_lea.vmem %s1145_s7, %s837_s21 }
  0x10   : > { %v936_v2 = vld [vmem:[%s276_s10] sm:$0xff]   ;;  %v937_v3 = vld [vmem:[%s276_s10 + $0x8] sm:$0xff]   ;;  %v938_v4 = vld [vmem:[%s276_s10 + $0x10] sm:$0xff]   ;;  %909 = vmatprep.subr.bf16.mxu1 %v945_v11 }
  0x11   : > { %891 = vmatprep.mubr.msk.bf16.mxu0 %vm356_vm0, %v936_v2  ;;  %v939_v5 = vld [vmem:[%s276_s10 + $0x18] sm:$0xff]   ;;  %v940_v6 = vld [vmem:[%s276_s10 + $0x20] sm:$0xff]   ;;  %v941_v7 = vld [vmem:[%s276_s10 + $0x28] sm:$0xff]  }
  0x12   : > { %892 = vmatmul.mubr.msk.bf16.vlgmr.msra.gmra.mxu0 %vm356_vm0, %v937_v3  ;;  %v942_v8 = vld [vmem:[%s276_s10 + $0x30] sm:$0xff]   ;;  %v943_v9 = vld [vmem:[%s276_s10 + $0x38] sm:$0xff]   ;;  %v1045_v10 = vld [vmem:[%s1142_s4] ss:$0 sm:$0xff] }
  0x13   : > { %895 = vmatprep.mubr.msk.bf16.mxu0 %vm356_vm0, %v938_v4  ;;  %910 = vmatpush3.bf16.msra.mxu1 %v945_v11 }
  0x1a   : > { %896 = vmatmul.mubr.msk.bf16.gmra.mxu0 %vm356_vm0, %v939_v5  ;;  %v665_v5 = vlaneseq }
  0x1b   : > { %899 = vmatprep.mubr.msk.bf16.mxu0 %vm356_vm0, %v940_v6 }
  0x1c   : > { %v666_v6 = vshrl.u32 %v665_v5, 7 }
  0x22   : > { %900 = vmatmul.mubr.msk.bf16.gmra.mxu0 %vm356_vm0, %v941_v7  ;;  %v663_v7 = vld [vmem:[%s1143_s5] sm:$0x1] }
  0x23   : > { %903 = vmatprep.mubr.msk.bf16.mxu0 %vm356_vm0, %v942_v8  ;;  %v664_v8 = vunpack.c.l.bf16 %v663_v7 }
  0x2a   : > { %904 = vmatmul.mubr.msk.bf16.gmra.mxu0 %vm356_vm0, %v943_v9  ;;  %v667_v9 = vsub.s32 0, %v666_v6 }
  0xd2   : > { %v893_v12 = vpop.f32.mrf.mxu0 }
  0xd3   : > { %v424_v18 = vadd.f32 %v893_v12, %v838_v14 }
  0xd4   : > { %v415_v13 = vpop.f32.mrf.mxu0 }
  0xd5   : > { %v416_v16 = vadd.f32 %v838_v14, %v415_v13  ;;  %v480_v25 = vmax.f32 %v424_v18, 0.0  ;;  %v1048_v13 = vrot.slane %v664_v8, %v667_v9 }
  0xd6   : > { %v894_v15 = vpop.f32.mrf.mxu0 }
  0xd7   : > { %v427_v17 = vadd.f32 %v894_v15, %v838_v14  ;;  %v478_v23 = vmax.f32 %v416_v16, 0.0 }
  0xd8   : > { %v418_v19 = vpop.f32.mrf.mxu0 }
  0xd9   : > { %v419_v20 = vadd.f32 %v838_v14, %v418_v19  ;;  %v481_v21 = vmax.f32 %v427_v17, 0.0 }
  0xda   : > { %v897_v22 = vpop.f32.mrf.mxu0 }
  0xdb   : > { %v479_v24 = vmax.f32 %v419_v20, 0.0  ;;  %v495_v28 = vpack.c.bf16 %v481_v21, %v480_v25  ;;  %v440_v32 = vadd.f32 %v897_v22, %v838_v14 }
  0xdc   : > { %v431_v26 = vpop.f32.mrf.mxu0 }
  0xdd   : > { %v494_v27 = vpack.c.bf16 %v479_v24, %v478_v23  ;;  %v432_v30 = vadd.f32 %v838_v14, %v431_v26  ;;  %v484_v39 = vmax.f32 %v440_v32, 0.0 }
  0xde   : > { %v898_v29 = vpop.f32.mrf.mxu0 }
  0xdf   : > { %v443_v31 = vadd.f32 %v898_v29, %v838_v14  ;;  %911 = vmatprep.mubr.msk.bf16.mxu1 %vm525_vm1, %v494_v27  ;;  %v482_v37 = vmax.f32 %v432_v30, 0.0 }
  0xe0   : > { %v434_v33 = vpop.f32.mrf.mxu0  ;;  %912 = vmatmul.mubr.msk.bf16.vlgmr.msra.gmra.mxu1 %vm525_vm1, %v495_v28 }
  0xe1   : > { %v435_v34 = vadd.f32 %v838_v14, %v434_v33  ;;  %v485_v35 = vmax.f32 %v443_v31, 0.0 }
  0xe2   : > { %v901_v36 = vpop.f32.mrf.mxu0 }
  0xe3   : > { %v483_v38 = vmax.f32 %v435_v34, 0.0  ;;  %v497_v42 = vpack.c.bf16 %v485_v35, %v484_v39  ;;  %v456_v46 = vadd.f32 %v901_v36, %v838_v14 }
  0xe4   : > { %v447_v40 = vpop.f32.mrf.mxu0 }
  0xe5   : > { %v496_v41 = vpack.c.bf16 %v483_v38, %v482_v37  ;;  %v448_v44 = vadd.f32 %v838_v14, %v447_v40  ;;  %v488_v53 = vmax.f32 %v456_v46, 0.0 }
  0xe6   : > { %v902_v43 = vpop.f32.mrf.mxu0 }
  0xe7   : > { %v459_v45 = vadd.f32 %v902_v43, %v838_v14  ;;  %915 = vmatprep.mubr.msk.bf16.mxu1 %vm525_vm1, %v496_v41  ;;  %v486_v51 = vmax.f32 %v448_v44, 0.0 }
  0xe8   : > { %v450_v47 = vpop.f32.mrf.mxu0  ;;  %916 = vmatmul.mubr.msk.bf16.gmra.mxu1 %vm525_vm1, %v497_v42 }
  0xe9   : > { %v451_v48 = vadd.f32 %v838_v14, %v450_v47  ;;  %v489_v49 = vmax.f32 %v459_v45, 0.0 }
  0xea   : > { %v905_v50 = vpop.f32.mrf.mxu0 }
  0xeb   : > { %v487_v52 = vmax.f32 %v451_v48, 0.0  ;;  %v499_v56 = vpack.c.bf16 %v489_v49, %v488_v53  ;;  %v472_v60 = vadd.f32 %v905_v50, %v838_v14 }
  0xec   : > { %v463_v54 = vpop.f32.mrf.mxu0 }
  0xed   : > { %v498_v55 = vpack.c.bf16 %v487_v52, %v486_v51  ;;  %v464_v58 = vadd.f32 %v838_v14, %v463_v54  ;;  %v492_v2 = vmax.f32 %v472_v60, 0.0 }
  0xee   : > { %v906_v57 = vpop.f32.mrf.mxu0 }
  0xef   : > { %v475_v59 = vadd.f32 %v906_v57, %v838_v14  ;;  %919 = vmatprep.mubr.msk.bf16.mxu1 %vm525_vm1, %v498_v55  ;;  %v490_v0 = vmax.f32 %v464_v58, 0.0 }
  0xf0   : > { %v466_v61 = vpop.f32.mrf.mxu0  ;;  %920 = vmatmul.mubr.msk.bf16.gmra.mxu1 %vm525_vm1, %v499_v56 }
  0xf1   : > { %v467_v62 = vadd.f32 %v838_v14, %v466_v61  ;;  %v493_v63 = vmax.f32 %v475_v59, 0.0 }
  0xf3   : > { %v491_v1 = vmax.f32 %v467_v62, 0.0  ;;  %v501_v4 = vpack.c.bf16 %v493_v63, %v492_v2 }
  0xf5   : > { %v500_v3 = vpack.c.bf16 %v491_v1, %v490_v0 }
  0xf7   : > { %923 = vmatprep.mubr.msk.bf16.mxu1 %vm525_vm1, %v500_v3 }
  0xf8   : > { %924 = vmatmul.mubr.msk.bf16.gmra.mxu1 %vm525_vm1, %v501_v4 }
 0x1a0   : > { %v913_v11 = vpop.f32.mrf.mxu1 }
 0x1a1   : > { %v593_v12 = vadd.f32 %v913_v11, %v1045_v10 }
 0x1a2   : > { %v584_v14 = vpop.f32.mrf.mxu1 }
 0x1a3   : > { %v649_v15 = vmax.f32 %v593_v12, 0.0  ;;  %v585_v16 = vadd.f32 %v1045_v10, %v584_v14 }
 0x1a4   : > { %v914_v17 = vpop.f32.mrf.mxu1 }
 0x1a5   : > { %v647_v18 = vmax.f32 %v585_v16, 0.0  ;;  %v596_v19 = vadd.f32 %v914_v17, %v1045_v10  ;;  %v671_v20 = vmul.f32 %v1048_v13, %v649_v15 }
 0x1a6   : > { %v587_v21 = vpop.f32.mrf.mxu1 }
 0x1a7   : > { %v650_v22 = vmax.f32 %v596_v19, 0.0  ;;  %v588_v23 = vadd.f32 %v1045_v10, %v587_v21  ;;  %v691_v24 = vsel %vm525_vm1, %v671_v20, 0.0  ;;  %v669_v25 = vmul.f32 %v1048_v13, %v647_v18 }
 0x1a8   : > { %692 = vadd.xlane.f32.xlu1 %v691_v24  ;;  %v917_v26 = vpop.f32.mrf.mxu1 }
 0x1a9   : > { %v648_v27 = vmax.f32 %v588_v23, 0.0  ;;  %v609_v28 = vadd.f32 %v917_v26, %v1045_v10  ;;  %v685_v29 = vsel %vm525_vm1, %v669_v25, 0.0  ;;  %v672_v30 = vmul.f32 %v1048_v13, %v650_v22 }
 0x1aa   : > { %v600_v31 = vpop.f32.mrf.mxu1  ;;  %686 = vadd.xlane.f32.xlu0 %v685_v29  ;;  %v867_v29 = vld [vmem:[#allocation2] ss:$0 sm:$0xff] }
 0x1ab   : > { %v653_v32 = vmax.f32 %v609_v28, 0.0  ;;  %v601_v33 = vadd.f32 %v1045_v10, %v600_v31  ;;  %v694_v34 = vsel %vm525_vm1, %v672_v30, 0.0  ;;  %v670_v35 = vmul.f32 %v1048_v13, %v648_v27 }
 0x1ac   : > { %695 = vadd.xlane.f32.xlu1 %v694_v34  ;;  %v918_v36 = vpop.f32.mrf.mxu1 }
 0x1ad   : > { %v651_v37 = vmax.f32 %v601_v33, 0.0  ;;  %v612_v38 = vadd.f32 %v918_v36, %v1045_v10  ;;  %v688_v39 = vsel %vm525_vm1, %v670_v35, 0.0  ;;  %v675_v40 = vmul.f32 %v1048_v13, %v653_v32 }
 0x1ae   : > { %v603_v41 = vpop.f32.mrf.mxu1  ;;  %689 = vadd.xlane.f32.xlu0 %v688_v39 }
 0x1af   : > { %v654_v42 = vmax.f32 %v612_v38, 0.0  ;;  %v604_v43 = vadd.f32 %v1045_v10, %v603_v41  ;;  %v703_v45 = vsel %vm525_vm1, %v675_v40, 0.0  ;;  %v673_v49 = vmul.f32 %v1048_v13, %v651_v37 }
 0x1b0   : > { %v921_v44 = vpop.f32.mrf.mxu1 }
 0x1b1   : > { %v652_v46 = vmax.f32 %v604_v43, 0.0  ;;  %v625_v47 = vadd.f32 %v921_v44, %v1045_v10  ;;  %v676_v48 = vmul.f32 %v1048_v13, %v654_v42  ;;  %v697_v58 = vsel %vm525_vm1, %v673_v49, 0.0 }
 0x1b2   : > { %v616_v50 = vpop.f32.mrf.mxu1  ;;  %704 = vadd.xlane.f32.xlu0 %v703_v45 }
 0x1b3   : > { %v657_v51 = vmax.f32 %v625_v47, 0.0  ;;  %v617_v52 = vadd.f32 %v1045_v10, %v616_v50  ;;  %v706_v53 = vsel %vm525_vm1, %v676_v48, 0.0  ;;  %v674_v54 = vmul.f32 %v1048_v13, %v652_v46 }
 0x1b4   : > { %707 = vadd.xlane.f32.xlu1 %v706_v53  ;;  %v922_v55 = vpop.f32.mrf.mxu1 }
 0x1b5   : > { %v655_v56 = vmax.f32 %v617_v52, 0.0  ;;  %v628_v57 = vadd.f32 %v922_v55, %v1045_v10  ;;  %v679_v59 = vmul.f32 %v1048_v13, %v657_v51  ;;  %v700_v63 = vsel %vm525_vm1, %v674_v54, 0.0 }
 0x1b6   : > { %v619_v60 = vpop.f32.mrf.mxu1  ;;  %698 = vadd.xlane.f32.xlu0 %v697_v58 }
 0x1b7   : > { %v658_v61 = vmax.f32 %v628_v57, 0.0  ;;  %v620_v62 = vadd.f32 %v1045_v10, %v619_v60  ;;  %v715_v1 = vsel %vm525_vm1, %v679_v59, 0.0  ;;  %v677_v5 = vmul.f32 %v1048_v13, %v655_v56 }
 0x1b8   : > { %v925_v0 = vpop.f32.mrf.mxu1  ;;  %701 = vadd.xlane.f32.xlu1 %v700_v63 }
 0x1b9   : > { %v656_v2 = vmax.f32 %v620_v62, 0.0  ;;  %v641_v3 = vadd.f32 %v925_v0, %v1045_v10  ;;  %v680_v4 = vmul.f32 %v1048_v13, %v658_v61  ;;  %v709_v16 = vsel %vm525_vm1, %v677_v5, 0.0 }
 0x1ba   : > { %v632_v6 = vpop.f32.mrf.mxu1  ;;  %716 = vadd.xlane.f32.xlu0 %v715_v1 }
 0x1bb   : > { %v633_v7 = vadd.f32 %v1045_v10, %v632_v6  ;;  %v718_v8 = vsel %vm525_vm1, %v680_v4, 0.0  ;;  %v678_v9 = vmul.f32 %v1048_v13, %v656_v2  ;;  %v661_v12 = vmax.f32 %v641_v3, 0.0 }
 0x1bc   : > { %v926_v11 = vpop.f32.mrf.mxu1  ;;  %719 = vadd.xlane.f32.xlu1 %v718_v8 }
 0x1bd   : > { %v659_v14 = vmax.f32 %v633_v7, 0.0  ;;  %v644_v15 = vadd.f32 %v926_v11, %v1045_v10  ;;  %v712_v19 = vsel %vm525_vm1, %v678_v9, 0.0  ;;  %v683_v24 = vmul.f32 %v1048_v13, %v661_v12 }
 0x1be   : > { %v635_v17 = vpop.f32.mrf.mxu1  ;;  %710 = vadd.xlane.f32.xlu0 %v709_v16 }
 0x1bf   : > { %v636_v18 = vadd.f32 %v1045_v10, %v635_v17  ;;  %v681_v20 = vmul.f32 %v1048_v13, %v659_v14  ;;  %v662_v21 = vmax.f32 %v644_v15, 0.0  ;;  %v727_v27 = vsel %vm525_vm1, %v683_v24, 0.0 }
 0x1c0   : > { %713 = vadd.xlane.f32.xlu1 %v712_v19 }
 0x1c1   : > { %v660_v22 = vmax.f32 %v636_v18, 0.0  ;;  %v721_v23 = vsel %vm525_vm1, %v681_v20, 0.0  ;;  %v684_v10 = vmul.f32 %v1048_v13, %v662_v21 }
 0x1c2   : > { %722 = vadd.xlane.f32.xlu0 %v721_v23 }
 0x1c3   : > { %v682_v25 = vmul.f32 %v1048_v13, %v660_v22  ;;  %v730_v28 = vsel %vm525_vm1, %v684_v10, 0.0 }
 0x1c5   : > { %v724_v26 = vsel %vm525_vm1, %v682_v25, 0.0 }
 0x1c6   : > { %725 = vadd.xlane.f32.xlu1 %v724_v26  ;;  %728 = vadd.xlane.f32.xlu0 %v727_v27 }
 0x1ca   : > { %731 = vadd.xlane.f32.xlu1 %v730_v28 }
 0x231   : > { %v693_v30 = vpop.xlane.xlu1 %692 }
 0x232   : > { %v742_v13 = vadd.f32 %v867_v29, %v693_v30 }
 0x233   : > { %v687_v31 = vpop.xlane.xlu0 %686 }
 0x234   : > { %759 = vst.msk [vmem:[%s1101_s24 + $0x10] sm:$0xff] %vm756_vm2, %v742_v13  ;;  %v740_v32 = vadd.f32 %v867_v29, %v687_v31 }
 0x235   : > { %v696_v33 = vpop.xlane.xlu1 %695 }
 0x236   : > { %757 = vst.msk [vmem:[%s1101_s24] sm:$0xff] %vm756_vm2, %v740_v32  ;;  %v743_v34 = vadd.f32 %v867_v29, %v696_v33 }
 0x237   : > { %v690_v35 = vpop.xlane.xlu0 %689 }
 0x238   : > { %760 = vst.msk [vmem:[%s1101_s24 + $0x18] sm:$0xff] %vm756_vm2, %v743_v34  ;;  %v741_v36 = vadd.f32 %v867_v29, %v690_v35 }
 0x23a   : > { %758 = vst.msk [vmem:[%s1101_s24 + $0x8] sm:$0xff] %vm756_vm2, %v741_v36 }
 0x23b   : > { %v705_v37 = vpop.xlane.xlu0 %704 }
 0x23c   : > { %v746_v38 = vadd.f32 %v867_v29, %v705_v37 }
 0x23d   : > { %v708_v39 = vpop.xlane.xlu1 %707 }
 0x23e   : > { %763 = vst.msk [vmem:[%s1101_s24 + $0x30] sm:$0xff] %vm756_vm2, %v746_v38  ;;  %v747_v40 = vadd.f32 %v867_v29, %v708_v39 }
 0x23f   : > { %v699_v41 = vpop.xlane.xlu0 %698 }
 0x240   : > { %764 = vst.msk [vmem:[%s1101_s24 + $0x38] sm:$0xff] %vm756_vm2, %v747_v40  ;;  %v744_v42 = vadd.f32 %v867_v29, %v699_v41 }
 0x241   : > { %v702_v43 = vpop.xlane.xlu1 %701 }
 0x242   : > { %761 = vst.msk [vmem:[%s1101_s24 + $0x20] sm:$0xff] %vm756_vm2, %v744_v42  ;;  %v745_v44 = vadd.f32 %v867_v29, %v702_v43 }
 0x243   : > { %v717_v45 = vpop.xlane.xlu0 %716 }
 0x244   : > { %762 = vst.msk [vmem:[%s1101_s24 + $0x28] sm:$0xff] %vm756_vm2, %v745_v44  ;;  %v750_v46 = vadd.f32 %v867_v29, %v717_v45 }
 0x245   : > { %v720_v47 = vpop.xlane.xlu1 %719 }
 0x246   : > { %767 = vst.msk [vmem:[%s1101_s24 + $0x50] sm:$0xff] %vm756_vm2, %v750_v46  ;;  %v751_v48 = vadd.f32 %v867_v29, %v720_v47 }
 0x247   : > { %v711_v49 = vpop.xlane.xlu0 %710 }
 0x248   : > { %768 = vst.msk [vmem:[%s1101_s24 + $0x58] sm:$0xff] %vm756_vm2, %v751_v48  ;;  %v748_v50 = vadd.f32 %v867_v29, %v711_v49 }
 0x249   : > { %v714_v51 = vpop.xlane.xlu1 %713 }
 0x24a   : > { %765 = vst.msk [vmem:[%s1101_s24 + $0x40] sm:$0xff] %vm756_vm2, %v748_v50  ;;  %v749_v52 = vadd.f32 %v867_v29, %v714_v51 }
 0x24b   : > { %v723_v53 = vpop.xlane.xlu0 %722 }
 0x24c   : > { %766 = vst.msk [vmem:[%s1101_s24 + $0x48] sm:$0xff] %vm756_vm2, %v749_v52  ;;  %v752_v54 = vadd.f32 %v867_v29, %v723_v53 }
 0x24e   : > { %769 = vst.msk [vmem:[%s1101_s24 + $0x60] sm:$0xff] %vm756_vm2, %v752_v54 }
 0x24f   : > { %v726_v55 = vpop.xlane.xlu1 %725  ;;  %v729_v56 = vpop.xlane.xlu0 %728 }
 0x250   : > { %v753_v57 = vadd.f32 %v867_v29, %v726_v55  ;;  %v754_v58 = vadd.f32 %v867_v29, %v729_v56 }
 0x252   : > { %770 = vst.msk [vmem:[%s1101_s24 + $0x68] sm:$0xff] %vm756_vm2, %v753_v57  ;;  %771 = vst.msk [vmem:[%s1101_s24 + $0x70] sm:$0xff] %vm756_vm2, %v754_v58 }
 0x253   : > { %v732_v59 = vpop.xlane.xlu1 %731 }
 0x254   : > { %v755_v60 = vadd.f32 %v867_v29, %v732_v59 }
 0x256   : > { %772 = vst.msk [vmem:[%s1101_s24 + $0x78] sm:$0xff] %vm756_vm2, %v755_v60 }
 0x257 PF: > { %s19_s26 = sadd.s32 1, %s952_s26  }
 0x258   : > { %p16_p4 = scmp.ge.s32.totalorder %s19_s26, 5  }
 0x25a   :  { %18 = sbr.rel (!%p16_p4) target bundleno = 3 (0x3), region = 78 }

</bundles_post_ra>
